<compile_context>
chip_gen: v6e
topology: v6e:2x2x1
jax: 0.10.0
libtpu: 0.0.40
codegen_flags: <defaults>
</compile_context>

<pallas_src>
import jax
import jax.numpy as jnp
from jax.experimental import pallas as pl
from jax.experimental.pallas import tpu as pltpu

NEG_SLOPE = 0.01   # nn.LeakyReLU default negative_slope
LANE = 128
SUBLANE = 8


def _round_up(x, m):
    return ((x + m - 1) // m) * m


def _vmem_capacity_bytes():
    try:
        return int(pltpu.get_tpu_info().vmem_capacity_bytes)
    except Exception:
        return 64 * 1024 * 1024   # conservative fallback: v7x per-TC capacity


def _decoder_kernel_factory(num_layers):
    """MLP forward: (Linear + LeakyReLU) x (num_layers-1), Linear, sigmoid.

    Ref order: [x, w0, b0, w1, b1, ..., out]. Weights bf16, biases f32.
    """

    def kernel(*refs):
        x_ref = refs[0]
        out_ref = refs[-1]
        params = refs[1:-1]

        h = x_ref[...]                                        # bf16 (tb, in_dim)
        for layer in range(num_layers):
            w = params[2 * layer][...]                        # bf16 (d_in, d_out)
            b = params[2 * layer + 1][...]                    # f32  (1, d_out)
            h = jnp.dot(h.astype(jnp.bfloat16), w,
                        preferred_element_type=jnp.float32) + b
            if layer < num_layers - 1:
                # LeakyReLU(0.01): one vmul + one vmax instead of cmp+select+mul.
                h = jnp.maximum(h, NEG_SLOPE * h)
        out_ref[...] = jax.nn.sigmoid(h).astype(out_ref.dtype)   # EUP epilogue

    return kernel


def decoder_forward(latents, context, weights, biases, obs_dim, *, tile_b=None):
    """latents: (B, latent_dim) f32, context: (B, context_dim) f32.
    weights[i]: (d_i, d_{i+1}) f32, biases[i]: (1, d_{i+1}) f32.
    Returns sigmoid output of shape (B, H, W) in f32."""
    B, latent_dim = latents.shape
    context_dim = context.shape[1]
    H, W = obs_dim
    obs_flat = H * W
    num_layers = len(weights)
    in_dim = latent_dim + context_dim
    assert weights[0].shape[0] == in_dim
    assert weights[-1].shape[1] == obs_flat

    # ---- concat + bf16 cast on the XLA side (tiny, free) ----
    x = jnp.concatenate([latents.astype(jnp.float32),
                         context.astype(jnp.float32)], axis=-1).astype(jnp.bfloat16)

    # ---- lane-pad EVERY layer's output width to a multiple of 128 (exact: zeros) ----
    padded_w, padded_b = [], []
    prev_pad = 0
    max_width = in_dim
    for w, b in zip(weights, biases):
        d_in, d_out = w.shape
        d_out_p = _round_up(d_out, LANE)
        padded_w.append(jnp.pad(w, ((0, prev_pad), (0, d_out_p - d_out))).astype(jnp.bfloat16))
        padded_b.append(jnp.pad(b, ((0, 0), (0, d_out_p - d_out))).astype(jnp.float32))
        prev_pad = d_out_p - d_out
        max_width = max(max_width, d_out_p)
    obs_flat_p = int(padded_w[-1].shape[1])

    param_bytes = sum(int(a.size) * a.dtype.itemsize for a in padded_w + padded_b)

    # ---- generation-aware VMEM accounting ----
    vmem_cap = _vmem_capacity_bytes()
    headroom = 12 * 1024 * 1024 if vmem_cap <= 64 * 1024 * 1024 else 24 * 1024 * 1024
    usable_vmem = max(vmem_cap - headroom, 16 * 1024 * 1024)
    default_scoped = 16 * 1024 * 1024        # conservative (v5e default; v6e/v7x = 32 MiB)

    def need_bytes(tb, weight_buffers):
        io = 2 * tb * (in_dim * 2 + obs_flat_p * 4)   # double-buffered bf16 in + f32 out tiles
        act = 3 * tb * max_width * 4                  # live f32 activations / accumulator
        return weight_buffers * param_bytes + io + act

    # ---- batch tile selection ----
    if tile_b is None:
        if B <= SUBLANE:
            tb = SUBLANE
        else:
            cands = [512, 256, 128] if vmem_cap >= 96 * 1024 * 1024 else [256, 128]
            tb = 128
            for c in cands:
                if need_bytes(c, 1) <= int(0.75 * usable_vmem):
                    tb = c
                    break
            tb = min(tb, _round_up(B, SUBLANE))
            # v7x (2 TCs/chip, 64 MiB VMEM): keep >=2 "parallel" batch steps when possible.
            if vmem_cap < 96 * 1024 * 1024 and tb > 128 and _round_up(B, tb) // tb < 2:
                tb = 128
    else:
        tb = tile_b if B >= tile_b else _round_up(B, SUBLANE)

    B_pad = _round_up(B, tb)
    x_p = jnp.pad(x, ((0, B_pad - B), (0, 0)))
    grid = (B_pad // tb,)

    operands = [x_p]
    for w, b in zip(padded_w, padded_b):
        operands += [w, b]

    cost = pl.CostEstimate(
        flops=2 * B_pad * sum(int(w.shape[0]) * int(w.shape[1]) for w in padded_w),
        transcendentals=B_pad * obs_flat_p,
        bytes_accessed=int(x_p.size) * x_p.dtype.itemsize + param_bytes
                       + B_pad * obs_flat_p * 4,
    )

    def run(use_buffered):
        weight_buffers = 1 if use_buffered else 2

        def param_spec(shape):
            if use_buffered:
                # Constant block index -> keep parameters single-buffered & VMEM-resident.
                return pl.BlockSpec(shape, lambda i: (0, 0), pipeline_mode=pl.Buffered(1))
            return pl.BlockSpec(shape, lambda i: (0, 0))

        in_specs = [pl.BlockSpec((tb, in_dim), lambda i: (i, 0))]
        for w, b in zip(padded_w, padded_b):
            in_specs += [param_spec(w.shape), param_spec(b.shape)]
        out_specs = pl.BlockSpec((tb, obs_flat_p), lambda i: (i, 0))

        need = need_bytes(tb, weight_buffers)
        vmem_limit = None
        if need > int(0.85 * default_scoped):
            vmem_limit = min(_round_up(need * 3 // 2, 1024 * 1024), usable_vmem)
            vmem_limit = max(vmem_limit, min(32 * 1024 * 1024, usable_vmem))
        # NOTE: if `need` ever exceeds `usable_vmem` (very large obs_flat on v7x), the
        # right fix is an output-N grid axis tiling the final layer; not needed here.

        out_flat = pl.pallas_call(
            _decoder_kernel_factory(num_layers),
            out_shape=jax.ShapeDtypeStruct((B_pad, obs_flat_p), jnp.float32),
            grid=grid,
            in_specs=in_specs,
            out_specs=out_specs,
            compiler_params=pltpu.CompilerParams(
                dimension_semantics=("parallel",),   # batch tiles split across TCs
                vmem_limit_bytes=vmem_limit,
            ),
            cost_estimate=cost,
        )(*operands)
        return jax.block_until_ready(out_flat)

    try:
        out_flat = run(use_buffered=True)        # single-buffered resident weights
    except Exception:
        out_flat = run(use_buffered=False)       # fallback: default double-buffering

    # glue: slice off lane padding + nn.Unflatten(-1, obs_dim)
    return out_flat[:B, :obs_flat].reshape(B, H, W)


def init_params(key, latent_dim, context_dim, hidden_dims, obs_dim):
    """Deterministic synthetic init mirroring MLP(latent+context, hidden + [H*W])."""
    obs_flat = obs_dim[0] * obs_dim[1]
    dims = [latent_dim + context_dim] + list(hidden_dims) + [obs_flat]
    weights, biases = [], []
    for i in range(len(dims) - 1):
        key, kw, kb = jax.random.split(key, 3)
        bound = 1.0 / (dims[i] ** 0.5)
        w = jax.random.uniform(kw, (dims[i], dims[i + 1]), jnp.float32, -bound, bound)
        b = jax.random.uniform(kb, (1, dims[i + 1]), jnp.float32, -bound, bound)
        weights.append(w)
        biases.append(b)
    return weights, biases


def reference_forward(latents, context, weights, biases, obs_dim):
    """Pure-JAX f32 reference of the same forward."""
    h = jnp.concatenate([latents, context], axis=-1)
    n = len(weights)
    for i, (w, b) in enumerate(zip(weights, biases)):
        h = h @ w + b
        if i < n - 1:
            h = jnp.where(h > 0, h, NEG_SLOPE * h)
    h = jax.nn.sigmoid(h)
    return h.reshape(h.shape[0], obs_dim[0], obs_dim[1])


if __name__ == "__main__":
    # Small shapes consistent with the module's forward.
    B = 8
    latent_dim = 8
    context_dim = 8
    hidden_dims = [32, 64]
    obs_dim = (16, 16)

    key = jax.random.PRNGKey(0)
    key, kl, kc = jax.random.split(key, 3)
    latents = jax.random.normal(kl, (B, latent_dim), jnp.float32)
    context = jax.random.normal(kc, (B, context_dim), jnp.float32)

    weights, biases = init_params(key, latent_dim, context_dim, hidden_dims, obs_dim)

    out = decoder_forward(latents, context, weights, biases, obs_dim)
    out = jax.block_until_ready(out)

    ref = reference_forward(latents, context, weights, biases, obs_dim)
    assert out.shape == (B, obs_dim[0], obs_dim[1])
    # bf16 matmul operands (f32 accumulation) -> loosened tolerance vs f32 reference.
    max_err = float(jnp.max(jnp.abs(out - ref)))
    assert max_err < 2e-2, f"Pallas kernel mismatch vs reference: {max_err}"

    print("KERNEL_OK")
</pallas_src>

<mosaic_0001>
module attributes {stable_mosaic.version = 11 : i64} {
  func.func @kernel(%arg0: i32, %arg1: memref<8x16xbf16, #tpu.memory_space<vmem>>, %arg2: memref<16x128xbf16, #tpu.memory_space<vmem>>, %arg3: memref<1x128xf32, #tpu.memory_space<vmem>>, %arg4: memref<128x128xbf16, #tpu.memory_space<vmem>>, %arg5: memref<1x128xf32, #tpu.memory_space<vmem>>, %arg6: memref<128x256xbf16, #tpu.memory_space<vmem>>, %arg7: memref<1x256xf32, #tpu.memory_space<vmem>>, %arg8: memref<8x256xf32, #tpu.memory_space<vmem>>) attributes {dimension_semantics = [#tpu.dimension_semantics<parallel>], iteration_bounds = array<i64: 1>, scalar_prefetch = 0 : i64, scratch_operands = 0 : i64, tpu.core_type = #tpu.core_type<tc>, window_params = [{transform_indices = @transform_0, window_bounds = array<i64: 8, 16>}, {pipeline_mode = #tpu.pipeline_mode<synchronous>, transform_indices = @transform_1, window_bounds = array<i64: 16, 128>}, {pipeline_mode = #tpu.pipeline_mode<synchronous>, transform_indices = @transform_2, window_bounds = array<i64: 1, 128>}, {pipeline_mode = #tpu.pipeline_mode<synchronous>, transform_indices = @transform_3, window_bounds = array<i64: 128, 128>}, {pipeline_mode = #tpu.pipeline_mode<synchronous>, transform_indices = @transform_4, window_bounds = array<i64: 1, 128>}, {pipeline_mode = #tpu.pipeline_mode<synchronous>, transform_indices = @transform_5, window_bounds = array<i64: 128, 256>}, {pipeline_mode = #tpu.pipeline_mode<synchronous>, transform_indices = @transform_6, window_bounds = array<i64: 1, 256>}, {transform_indices = @transform_7, window_bounds = array<i64: 8, 256>}]} {
    %c0 = arith.constant 0 : index
    %c0_0 = arith.constant 0 : index
    %0 = vector.load %arg1[%c0, %c0_0] : memref<8x16xbf16, #tpu.memory_space<vmem>>, vector<8x16xbf16>
    %c0_1 = arith.constant 0 : index
    %c0_2 = arith.constant 0 : index
    %1 = vector.load %arg2[%c0_1, %c0_2] : memref<16x128xbf16, #tpu.memory_space<vmem>>, vector<16x128xbf16>
    %c0_3 = arith.constant 0 : index
    %c0_4 = arith.constant 0 : index
    %2 = vector.load %arg3[%c0_3, %c0_4] : memref<1x128xf32, #tpu.memory_space<vmem>>, vector<1x128xf32>
    %cst = arith.constant dense<0.000000e+00> : vector<8x128xf32>
    %3 = tpu.matmul %0, %1, %cst {dimension_numbers = #tpu.dot_dimension_numbers<[1], [0], [0], [1], [0, 0, 1, 1], [], []>} : vector<8x16xbf16>, vector<16x128xbf16>, vector<8x128xf32> -> vector<8x128xf32>
    %4 = vector.broadcast %2 : vector<1x128xf32> to vector<8x128xf32>
    %5 = arith.addf %3, %4 : vector<8x128xf32>
    %cst_5 = arith.constant 0.00999999977 : f32
    %6 = vector.broadcast %cst_5 : f32 to vector<8x128xf32>
    %7 = arith.mulf %6, %5 : vector<8x128xf32>
    %8 = arith.maximumf %5, %7 : vector<8x128xf32>
    %c0_6 = arith.constant 0 : index
    %c0_7 = arith.constant 0 : index
    %9 = vector.load %arg4[%c0_6, %c0_7] : memref<128x128xbf16, #tpu.memory_space<vmem>>, vector<128x128xbf16>
    %c0_8 = arith.constant 0 : index
    %c0_9 = arith.constant 0 : index
    %10 = vector.load %arg5[%c0_8, %c0_9] : memref<1x128xf32, #tpu.memory_space<vmem>>, vector<1x128xf32>
    %11 = arith.truncf %8 : vector<8x128xf32> to vector<8x128xbf16>
    %cst_10 = arith.constant dense<0.000000e+00> : vector<8x128xf32>
    %12 = tpu.matmul %11, %9, %cst_10 {dimension_numbers = #tpu.dot_dimension_numbers<[1], [0], [0], [1], [0, 0, 1, 1], [], []>} : vector<8x128xbf16>, vector<128x128xbf16>, vector<8x128xf32> -> vector<8x128xf32>
    %13 = vector.broadcast %10 : vector<1x128xf32> to vector<8x128xf32>
    %14 = arith.addf %12, %13 : vector<8x128xf32>
    %cst_11 = arith.constant 0.00999999977 : f32
    %15 = vector.broadcast %cst_11 : f32 to vector<8x128xf32>
    %16 = arith.mulf %15, %14 : vector<8x128xf32>
    %17 = arith.maximumf %14, %16 : vector<8x128xf32>
    %c0_12 = arith.constant 0 : index
    %c0_13 = arith.constant 0 : index
    %18 = vector.load %arg6[%c0_12, %c0_13] : memref<128x256xbf16, #tpu.memory_space<vmem>>, vector<128x256xbf16>
    %c0_14 = arith.constant 0 : index
    %c0_15 = arith.constant 0 : index
    %19 = vector.load %arg7[%c0_14, %c0_15] : memref<1x256xf32, #tpu.memory_space<vmem>>, vector<1x256xf32>
    %20 = arith.truncf %17 : vector<8x128xf32> to vector<8x128xbf16>
    %cst_16 = arith.constant dense<0.000000e+00> : vector<8x256xf32>
    %21 = tpu.matmul %20, %18, %cst_16 {dimension_numbers = #tpu.dot_dimension_numbers<[1], [0], [0], [1], [0, 0, 1, 1], [], []>} : vector<8x128xbf16>, vector<128x256xbf16>, vector<8x256xf32> -> vector<8x256xf32>
    %22 = vector.broadcast %19 : vector<1x256xf32> to vector<8x256xf32>
    %23 = arith.addf %21, %22 : vector<8x256xf32>
    %24 = arith.negf %23 : vector<8x256xf32>
    %25 = math.exp %24 : vector<8x256xf32>
    %cst_17 = arith.constant 1.000000e+00 : f32
    %26 = vector.broadcast %cst_17 : f32 to vector<8x256xf32>
    %27 = arith.addf %26, %25 : vector<8x256xf32>
    %28 = arith.divf %26, %27 : vector<8x256xf32>
    %c0_18 = arith.constant 0 : index
    %c0_19 = arith.constant 0 : index
    %29 = vector.load %arg8[%c0_18, %c0_19] : memref<8x256xf32, #tpu.memory_space<vmem>>, vector<8x256xf32>
    tpu.vector_store %arg8[%c0_18, %c0_19], %28 {strides = array<i32>} : memref<8x256xf32, #tpu.memory_space<vmem>>, vector<8x256xf32>,
    return
  }
  func.func @transform_0(%arg0: i32) -> (i32, i32) {
    %c0_i32 = arith.constant 0 : i32
    %c0_i32_0 = arith.constant 0 : i32
    return %arg0, %c0_i32 : i32, i32
  }
  func.func @transform_1(%arg0: i32) -> (i32, i32) {
    %c0_i32 = arith.constant 0 : i32
    %c0_i32_0 = arith.constant 0 : i32
    %c0_i32_1 = arith.constant 0 : i32
    return %c0_i32, %c0_i32_0 : i32, i32
  }
  func.func @transform_2(%arg0: i32) -> (i32, i32) {
    %c0_i32 = arith.constant 0 : i32
    %c0_i32_0 = arith.constant 0 : i32
    %c0_i32_1 = arith.constant 0 : i32
    return %c0_i32, %c0_i32_0 : i32, i32
  }
  func.func @transform_3(%arg0: i32) -> (i32, i32) {
    %c0_i32 = arith.constant 0 : i32
    %c0_i32_0 = arith.constant 0 : i32
    %c0_i32_1 = arith.constant 0 : i32
    return %c0_i32, %c0_i32_0 : i32, i32
  }
  func.func @transform_4(%arg0: i32) -> (i32, i32) {
    %c0_i32 = arith.constant 0 : i32
    %c0_i32_0 = arith.constant 0 : i32
    %c0_i32_1 = arith.constant 0 : i32
    return %c0_i32, %c0_i32_0 : i32, i32
  }
  func.func @transform_5(%arg0: i32) -> (i32, i32) {
    %c0_i32 = arith.constant 0 : i32
    %c0_i32_0 = arith.constant 0 : i32
    %c0_i32_1 = arith.constant 0 : i32
    return %c0_i32, %c0_i32_0 : i32, i32
  }
  func.func @transform_6(%arg0: i32) -> (i32, i32) {
    %c0_i32 = arith.constant 0 : i32
    %c0_i32_0 = arith.constant 0 : i32
    %c0_i32_1 = arith.constant 0 : i32
    return %c0_i32, %c0_i32_0 : i32, i32
  }
  func.func @transform_7(%arg0: i32) -> (i32, i32) {
    %c0_i32 = arith.constant 0 : i32
    %c0_i32_0 = arith.constant 0 : i32
    return %arg0, %c0_i32 : i32, i32
  }
}

module attributes {stable_mosaic.version = 11 : i64} {
  func.func @kernel(%arg0: i32, %arg1: memref<8x16xbf16, #tpu.memory_space<vmem>>, %arg2: memref<16x128xbf16, #tpu.memory_space<vmem>>, %arg3: memref<1x128xf32, #tpu.memory_space<vmem>>, %arg4: memref<128x128xbf16, #tpu.memory_space<vmem>>, %arg5: memref<1x128xf32, #tpu.memory_space<vmem>>, %arg6: memref<128x256xbf16, #tpu.memory_space<vmem>>, %arg7: memref<1x256xf32, #tpu.memory_space<vmem>>, %arg8: memref<8x256xf32, #tpu.memory_space<vmem>>) attributes {dimension_semantics = [#tpu.dimension_semantics<parallel>], iteration_bounds = array<i64: 1>, scalar_prefetch = 0 : i64, scratch_operands = 0 : i64, tpu.core_type = #tpu.core_type<tc>, window_params = [{transform_indices = @transform_0, window_bounds = array<i64: 8, 16>}, {pipeline_mode = #tpu.pipeline_mode<synchronous>, transform_indices = @transform_1, window_bounds = array<i64: 16, 128>}, {pipeline_mode = #tpu.pipeline_mode<synchronous>, transform_indices = @transform_2, window_bounds = array<i64: 1, 128>}, {pipeline_mode = #tpu.pipeline_mode<synchronous>, transform_indices = @transform_3, window_bounds = array<i64: 128, 128>}, {pipeline_mode = #tpu.pipeline_mode<synchronous>, transform_indices = @transform_4, window_bounds = array<i64: 1, 128>}, {pipeline_mode = #tpu.pipeline_mode<synchronous>, transform_indices = @transform_5, window_bounds = array<i64: 128, 256>}, {pipeline_mode = #tpu.pipeline_mode<synchronous>, transform_indices = @transform_6, window_bounds = array<i64: 1, 256>}, {transform_indices = @transform_7, window_bounds = array<i64: 8, 256>}]} {
    %c0 = arith.constant 0 : index
    %c0_0 = arith.constant 0 : index
    %0 = vector.load %arg1[%c0, %c0_0] : memref<8x16xbf16, #tpu.memory_space<vmem>>, vector<8x16xbf16>
    %c0_1 = arith.constant 0 : index
    %c0_2 = arith.constant 0 : index
    %1 = vector.load %arg2[%c0_1, %c0_2] : memref<16x128xbf16, #tpu.memory_space<vmem>>, vector<16x128xbf16>
    %c0_3 = arith.constant 0 : index
    %c0_4 = arith.constant 0 : index
    %2 = vector.load %arg3[%c0_3, %c0_4] : memref<1x128xf32, #tpu.memory_space<vmem>>, vector<1x128xf32>
    %cst = arith.constant dense<0.000000e+00> : vector<8x128xf32>
    %3 = tpu.matmul %0, %1, %cst {dimension_numbers = #tpu.dot_dimension_numbers<[1], [0], [0], [1], [0, 0, 1, 1], [], []>} : vector<8x16xbf16>, vector<16x128xbf16>, vector<8x128xf32> -> vector<8x128xf32>
    %4 = vector.broadcast %2 : vector<1x128xf32> to vector<8x128xf32>
    %5 = arith.addf %3, %4 : vector<8x128xf32>
    %cst_5 = arith.constant 0.00999999977 : f32
    %6 = vector.broadcast %cst_5 : f32 to vector<8x128xf32>
    %7 = arith.mulf %6, %5 : vector<8x128xf32>
    %8 = arith.maximumf %5, %7 : vector<8x128xf32>
    %c0_6 = arith.constant 0 : index
    %c0_7 = arith.constant 0 : index
    %9 = vector.load %arg4[%c0_6, %c0_7] : memref<128x128xbf16, #tpu.memory_space<vmem>>, vector<128x128xbf16>
    %c0_8 = arith.constant 0 : index
    %c0_9 = arith.constant 0 : index
    %10 = vector.load %arg5[%c0_8, %c0_9] : memref<1x128xf32, #tpu.memory_space<vmem>>, vector<1x128xf32>
    %11 = arith.truncf %8 : vector<8x128xf32> to vector<8x128xbf16>
    %cst_10 = arith.constant dense<0.000000e+00> : vector<8x128xf32>
    %12 = tpu.matmul %11, %9, %cst_10 {dimension_numbers = #tpu.dot_dimension_numbers<[1], [0], [0], [1], [0, 0, 1, 1], [], []>} : vector<8x128xbf16>, vector<128x128xbf16>, vector<8x128xf32> -> vector<8x128xf32>
    %13 = vector.broadcast %10 : vector<1x128xf32> to vector<8x128xf32>
    %14 = arith.addf %12, %13 : vector<8x128xf32>
    %cst_11 = arith.constant 0.00999999977 : f32
    %15 = vector.broadcast %cst_11 : f32 to vector<8x128xf32>
    %16 = arith.mulf %15, %14 : vector<8x128xf32>
    %17 = arith.maximumf %14, %16 : vector<8x128xf32>
    %c0_12 = arith.constant 0 : index
    %c0_13 = arith.constant 0 : index
    %18 = vector.load %arg6[%c0_12, %c0_13] : memref<128x256xbf16, #tpu.memory_space<vmem>>, vector<128x256xbf16>
    %c0_14 = arith.constant 0 : index
    %c0_15 = arith.constant 0 : index
    %19 = vector.load %arg7[%c0_14, %c0_15] : memref<1x256xf32, #tpu.memory_space<vmem>>, vector<1x256xf32>
    %20 = arith.truncf %17 : vector<8x128xf32> to vector<8x128xbf16>
    %cst_16 = arith.constant dense<0.000000e+00> : vector<8x256xf32>
    %21 = tpu.matmul %20, %18, %cst_16 {dimension_numbers = #tpu.dot_dimension_numbers<[1], [0], [0], [1], [0, 0, 1, 1], [], []>} : vector<8x128xbf16>, vector<128x256xbf16>, vector<8x256xf32> -> vector<8x256xf32>
    %22 = vector.broadcast %19 : vector<1x256xf32> to vector<8x256xf32>
    %23 = arith.addf %21, %22 : vector<8x256xf32>
    %24 = arith.negf %23 : vector<8x256xf32>
    %25 = math.exp %24 : vector<8x256xf32>
    %cst_17 = arith.constant 1.000000e+00 : f32
    %26 = vector.broadcast %cst_17 : f32 to vector<8x256xf32>
    %27 = arith.addf %26, %25 : vector<8x256xf32>
    %28 = arith.divf %26, %27 : vector<8x256xf32>
    %c0_18 = arith.constant 0 : index
    %c0_19 = arith.constant 0 : index
    %29 = vector.load %arg8[%c0_18, %c0_19] : memref<8x256xf32, #tpu.memory_space<vmem>>, vector<8x256xf32>
    tpu.vector_store %arg8[%c0_18, %c0_19], %28 {strides = array<i32>} : memref<8x256xf32, #tpu.memory_space<vmem>>, vector<8x256xf32>,
    return
  }
  func.func @transform_0(%arg0: i32) -> (i32, i32) {
    %c0_i32 = arith.constant 0 : i32
    %c0_i32_0 = arith.constant 0 : i32
    return %arg0, %c0_i32 : i32, i32
  }
  func.func @transform_1(%arg0: i32) -> (i32, i32) {
    %c0_i32 = arith.constant 0 : i32
    %c0_i32_0 = arith.constant 0 : i32
    %c0_i32_1 = arith.constant 0 : i32
    return %c0_i32, %c0_i32_0 : i32, i32
  }
  func.func @transform_2(%arg0: i32) -> (i32, i32) {
    %c0_i32 = arith.constant 0 : i32
    %c0_i32_0 = arith.constant 0 : i32
    %c0_i32_1 = arith.constant 0 : i32
    return %c0_i32, %c0_i32_0 : i32, i32
  }
  func.func @transform_3(%arg0: i32) -> (i32, i32) {
    %c0_i32 = arith.constant 0 : i32
    %c0_i32_0 = arith.constant 0 : i32
    %c0_i32_1 = arith.constant 0 : i32
    return %c0_i32, %c0_i32_0 : i32, i32
  }
  func.func @transform_4(%arg0: i32) -> (i32, i32) {
    %c0_i32 = arith.constant 0 : i32
    %c0_i32_0 = arith.constant 0 : i32
    %c0_i32_1 = arith.constant 0 : i32
    return %c0_i32, %c0_i32_0 : i32, i32
  }
  func.func @transform_5(%arg0: i32) -> (i32, i32) {
    %c0_i32 = arith.constant 0 : i32
    %c0_i32_0 = arith.constant 0 : i32
    %c0_i32_1 = arith.constant 0 : i32
    return %c0_i32, %c0_i32_0 : i32, i32
  }
  func.func @transform_6(%arg0: i32) -> (i32, i32) {
    %c0_i32 = arith.constant 0 : i32
    %c0_i32_0 = arith.constant 0 : i32
    %c0_i32_1 = arith.constant 0 : i32
    return %c0_i32, %c0_i32_0 : i32, i32
  }
  func.func @transform_7(%arg0: i32) -> (i32, i32) {
    %c0_i32 = arith.constant 0 : i32
    %c0_i32_0 = arith.constant 0 : i32
    return %arg0, %c0_i32 : i32, i32
  }
}

</mosaic_0001>

<bundles_post_ra>
// kernel: tpu_custom_call.1
= control target key start
LH: loop header
LB: loop body
LE: loop exit
PB: predicated region body
PF: predicated region fallthrough
CT: control target
= control target key end

     0   :  { %12 = vsyncpa [#allocation3], 0  ;;  %s742_s0 = inlined_call_operand.hbm [shape: bf16[8,16], index: 0, kind: input, shape index: {}]   ;;  %s743_s1 = inlined_call_operand.hbm [shape: bf16[16,128], index: 1, kind: input, shape index: {}]   ;;  %s744_s2 = inlined_call_operand.vmem [shape: f32[1,128], index: 2, kind: input, shape index: {}]   ;;  %s745_s3 = inlined_call_operand.hbm [shape: bf16[128,128], index: 3, kind: input, shape index: {}]   ;;  %s746_s4 = inlined_call_operand.vmem [shape: f32[1,128], index: 4, kind: input, shape index: {}]   ;;  %s747_s5 = inlined_call_operand.hbm [shape: bf16[128,256], index: 5, kind: input, shape index: {}]   ;;  %s748_s6 = inlined_call_operand.vmem [shape: f32[1,256], index: 6, kind: input, shape index: {}]   ;;  %s749_s7 = inlined_call_operand.hbm [shape: f32[8,256], index: 7, kind: output, shape index: {}]  }
   0x1   :  { %13 = vsyncpa [#allocation6], 0 }
   0x2   :  { %14 = vsyncpa [#allocation9], 0 }
   0x3   :  { %15 = vsyncpa [#allocation4], 0  ;;  %s666_s24 = smov [#allocation5]  }
   0x4   :  { %s31_s25 = sshll.u32 %s666_s24, 4  ;;  %s32_s25 = int_to_ptr.vmem [resolvable:$true] %s31_s25 }
   0x5   :  { %s566_s26 = scalar_lea.vmem %s32_s25, 128  ;;  %p571_p1 = scmp.lt.s32.totalorder %s32_s25, %s32_s25 }
   0x6   :  { %p567_p0 = scmp.ne.s32.totalorder %s32_s25, %s566_s26  ;;  %p572_p2 = scmp.lt.s32.totalorder %s566_s26, %s566_s26 }
   0x8   :  { %p573_p3 = por %p572_p2, %p571_p1 }
   0xa   :  { %p574_p4 = pnand %p573_p3, %p567_p0 }
   0xc   :  { %577 = shalt.err (!%p574_p4)
}
   0xd   :  { %s667_s27 = smov 64   ;;  %s668_s28 = smov 4  }
   0xe   :  { %37 = dma.hbm_to_vmem [thread:$0]  %s743_s1, 128, %s32_s25, [#allocation6], %s667_s27, %s667_s27, %s668_s28  }
   0xf   :  { %s669_s8 = smov [#allocation2]   ;;  %s670_s10 = smov [#allocation7]  }
  0x10   :  { %s22_s9 = sshll.u32 %s669_s8, 4  ;;  %s45_s11 = sshll.u32 %s670_s10, 4  ;;  %s23_s9 = int_to_ptr.vmem [resolvable:$true] %s22_s9  ;;  %s46_s11 = int_to_ptr.vmem [resolvable:$true] %s45_s11 }
  0x11   :  { %s586_s12 = scalar_lea.vmem %s23_s9, 64  ;;  %p591_p6 = scmp.lt.s32.totalorder %s23_s9, %s23_s9 }
  0x12   :  { %p587_p5 = scmp.ne.s32.totalorder %s23_s9, %s586_s12  ;;  %p592_p7 = scmp.lt.s32.totalorder %s586_s12, %s586_s12 }
  0x14   :  { %p593_p8 = por %p592_p7, %p591_p6 }
  0x16   :  { %p594_p9 = pnand %p593_p8, %p587_p5 }
  0x18   :  { %597 = shalt.err (!%p594_p9)
}
  0x19   :  { %25 = dma.hbm_to_vmem [thread:$0]  %s742_s0, 64, %s23_s9, [#allocation3]  }
  0x1a   :  { %s606_s15 = scalar_lea.vmem %s46_s11, 1024  ;;  %p611_p11 = scmp.lt.s32.totalorder %s46_s11, %s46_s11 }
  0x1b   :  { %p607_p10 = scmp.ne.s32.totalorder %s46_s11, %s606_s15  ;;  %p612_p12 = scmp.lt.s32.totalorder %s606_s15, %s606_s15 }
  0x1d   :  { %p613_p13 = por %p612_p12, %p611_p11 }
  0x1f   :  { %p614_p0 = pnand %p613_p13, %p607_p10 }
  0x21   :  { %617 = shalt.err (!%p614_p0)
}
  0x22   :  { %51 = dma.hbm_to_vmem [thread:$0]  %s745_s3, 1024, %s46_s11, [#allocation6], %s667_s27, %s667_s27, %s668_s28  }
  0x23   :  { %s671_s17 = smov [#allocation8]  }
  0x24   :  { %s59_s18 = sshll.u32 %s671_s17, 4  ;;  %s60_s18 = int_to_ptr.vmem [resolvable:$true] %s59_s18 }
  0x25   :  { %s626_s19 = scalar_lea.vmem %s60_s18, 2048  ;;  %p631_p2 = scmp.lt.s32.totalorder %s60_s18, %s60_s18 }
  0x26   :  { %p627_p1 = scmp.ne.s32.totalorder %s60_s18, %s626_s19  ;;  %p632_p3 = scmp.lt.s32.totalorder %s626_s19, %s626_s19 }
  0x28   :  { %p633_p4 = por %p632_p3, %p631_p2 }
  0x2a   :  { %p634_p5 = pnand %p633_p4, %p627_p1 }
  0x2c   :  { %637 = shalt.err (!%p634_p5)
}
  0x2d   :  { %s672_s0 = smov 128   ;;  %s673_s20 = smov 8  }
  0x2e   :  { %65 = dma.hbm_to_vmem [thread:$0]  %s747_s5, 2048, %s60_s18, [#allocation9], %s672_s0, %s672_s0, %s673_s20  }
  0x2f   :  { %658 = dma.done.wait [#allocation3], 64  }
  0x30   :  { %659 = vsyncadd [#allocation3], 4294967232 }
  0x31   :  { %660 = dma.done.wait [#allocation6], 1152  }
  0x32   :  { %661 = vsyncadd [#allocation6], 4294966144 }
  0x33   :  { %662 = dma.done.wait [#allocation9], 2048  }
  0x34   :  { %663 = vsyncadd [#allocation9], 4294965248  ;;  %v674_v0 = vmov 0.0   ;;  %vm675_vm0 = vmmov 0   ;;  %v517_v1 = vld [vmem:[#allocation5] sm:$0xff]   ;;  %vm97_vm1 = vcmask 130048   ;;  %v276_v46 = vlaneseq }
  0x35   :  { %479 = vmatprep.subr.bf16.mxu0 %v674_v0  ;;  %481 = vmatprep.mubr.msk.bf16.mxu0 %vm675_vm0, %v674_v0  ;;  %v81_v2 = vld [vmem:[#allocation2] sm:$0xf]  ;;  %v518_v3 = vld [vmem:[#allocation7 + $0x38] sm:$0xff]   ;;  %v520_v5 = vld [vmem:[#allocation7 + $0x28] sm:$0xff]   ;;  %v676_v36 = vmov 0  }
  0x36   :  { %485 = vmatprep.subr.bf16.mxu1 %v674_v0  ;;  %501 = vmatprep.mubr.msk.bf16.mxu1 %vm675_vm0, %v674_v0  ;;  %v519_v4 = vld [vmem:[#allocation7 + $0x30] sm:$0xff]   ;;  %v521_v6 = vld [vmem:[#allocation7 + $0x20] sm:$0xff]   ;;  %v522_v7 = vld [vmem:[#allocation7 + $0x18] sm:$0xff]   ;;  %v277_v47 = vshrl.u32 %v276_v46, 7 }
  0x37   :  { %480 = vmatpush3.bf16.msra.mxu0 %v517_v1  ;;  %486 = vmatpush3.bf16.msra.mxu1 %v518_v3  ;;  %v523_v8 = vld [vmem:[#allocation7 + $0x10] sm:$0xff]   ;;  %v524_v9 = vld [vmem:[#allocation7 + $0x8] sm:$0xff]   ;;  %v525_v10 = vld [vmem:[#allocation7] sm:$0xff]  }
  0x38   :  { %487 = vmatprep.subr.bf16.mxu1 %v674_v0  ;;  %v526_v11 = vld [vmem:[#allocation8 + $0x70] ss:$8 sps:$4 sm:$0xff]   ;;  %v528_v12 = vld [vmem:[#allocation8 + $0x74] ss:$8 sps:$4 sm:$0xff]   ;;  %v531_v13 = vld [vmem:[#allocation8 + $0x64] ss:$8 sps:$4 sm:$0xff]  }
  0x39   :  { %366 = vmatprep.subr.bf16.mxu0 %v528_v12  ;;  %v529_v14 = vld [vmem:[#allocation8 + $0x60] ss:$8 sps:$4 sm:$0xff]   ;;  %v534_v15 = vld [vmem:[#allocation8 + $0x54] ss:$8 sps:$4 sm:$0xff]   ;;  %v532_v16 = vld [vmem:[#allocation8 + $0x50] ss:$8 sps:$4 sm:$0xff]  }
  0x3a   :  { %482 = vmatmul.mubr.msk.bf16.vlgmr.msra.gmra.mxu0 %vm97_vm1, %v81_v2  ;;  %v537_v17 = vld [vmem:[#allocation8 + $0x44] ss:$8 sps:$4 sm:$0xff]   ;;  %v535_v18 = vld [vmem:[#allocation8 + $0x40] ss:$8 sps:$4 sm:$0xff]   ;;  %v540_v19 = vld [vmem:[#allocation8 + $0x34] ss:$8 sps:$4 sm:$0xff]  }
  0x3b   :  { %488 = vmatpush3.bf16.msra.mxu1 %v519_v4  ;;  %367 = vmatpush1.bf16.msra.mxu0 %v526_v11  ;;  %v538_v20 = vld [vmem:[#allocation8 + $0x30] ss:$8 sps:$4 sm:$0xff]   ;;  %v543_v21 = vld [vmem:[#allocation8 + $0x24] ss:$8 sps:$4 sm:$0xff]   ;;  %v541_v22 = vld [vmem:[#allocation8 + $0x20] ss:$8 sps:$4 sm:$0xff]  }
  0x3c   :  { %489 = vmatprep.subr.bf16.mxu1 %v674_v0  ;;  %368 = vmatprep.subr.bf16.mxu0 %v531_v13  ;;  %v438_v23 = vld [vmem:[%s744_s2] ss:$0 sm:$0xff]  ;;  %v544_v33 = vld [vmem:[#allocation8 + $0x10] ss:$8 sps:$4 sm:$0xff]   ;;  %v549_v34 = vld [vmem:[#allocation8 + $0x4] ss:$8 sps:$4 sm:$0xff]  }
  0x3d   :  { %v546_v32 = vld [vmem:[#allocation8 + $0x14] ss:$8 sps:$4 sm:$0xff]   ;;  %v547_v35 = vld [vmem:[#allocation8] ss:$8 sps:$4 sm:$0xff]   ;;  %398 = vmatprep.mubr.bf16.mxu0 %v676_v36  ;;  %v278_v48 = vsub.s32 0, %v277_v47  ;;  %v282_v50 = vsub.s32 1, %v277_v47 }
  0x3e   :  { %v441_v37 = vld [vmem:[%s746_s4] ss:$0 sm:$0xff]  ;;  %s677_s4 = smov [#allocation10]  }
  0x3f   :  { %490 = vmatpush3.bf16.msra.mxu1 %v520_v5  ;;  %369 = vmatpush1.bf16.msra.mxu0 %v529_v14  ;;  %v273_v49 = vld [vmem:[%s748_s6] sm:$0x3]  ;;  %s427_s6 = sshll.u32 %s677_s4, 4  ;;  %s428_s6 = int_to_ptr.vmem [resolvable:$true] %s427_s6 }
  0x40   :  { %491 = vmatprep.subr.bf16.mxu1 %v674_v0  ;;  %370 = vmatprep.subr.bf16.mxu0 %v534_v15  ;;  %v279_v51 = vrot.slane %v273_v49, %v278_v48  ;;  %v283_v52 = vrot.slane %v273_v49, %v282_v50  ;;  %s638_s26 = scalar_lea.vmem %s428_s6, 256  ;;  %p643_p7 = scmp.lt.s32.totalorder %s428_s6, %s428_s6 }
  0x41   :  { %p639_p6 = scmp.ne.s32.totalorder %s428_s6, %s638_s26  ;;  %p644_p8 = scmp.lt.s32.totalorder %s638_s26, %s638_s26 }
  0x43   :  { %492 = vmatpush3.bf16.msra.mxu1 %v521_v6  ;;  %371 = vmatpush1.bf16.msra.mxu0 %v532_v16  ;;  %p645_p9 = por %p644_p8, %p643_p7 }
  0x44   :  { %493 = vmatprep.subr.bf16.mxu1 %v674_v0  ;;  %372 = vmatprep.subr.bf16.mxu0 %v537_v17 }
  0x45   :  { %p646_p10 = pnand %p645_p9, %p639_p6 }
  0x47   :  { %494 = vmatpush3.bf16.msra.mxu1 %v522_v7  ;;  %373 = vmatpush1.bf16.msra.mxu0 %v535_v18 }
  0x48   :  { %495 = vmatprep.subr.bf16.mxu1 %v674_v0  ;;  %374 = vmatprep.subr.bf16.mxu0 %v540_v19 }
  0x4b   :  { %496 = vmatpush3.bf16.msra.mxu1 %v523_v8  ;;  %375 = vmatpush1.bf16.msra.mxu0 %v538_v20 }
  0x4c   :  { %497 = vmatprep.subr.bf16.mxu1 %v674_v0  ;;  %376 = vmatprep.subr.bf16.mxu0 %v543_v21 }
  0x4f   :  { %498 = vmatpush3.bf16.msra.mxu1 %v524_v9  ;;  %377 = vmatpush1.bf16.msra.mxu0 %v541_v22 }
  0x50   :  { %499 = vmatprep.subr.bf16.mxu1 %v674_v0  ;;  %378 = vmatprep.subr.bf16.mxu0 %v546_v32 }
  0x53   :  { %500 = vmatpush3.bf16.msra.mxu1 %v525_v10  ;;  %379 = vmatpush1.bf16.msra.mxu0 %v544_v33 }
  0x54   :  { %380 = vmatprep.subr.bf16.mxu0 %v549_v34 }
  0x57   :  { %381 = vmatpush1.bf16.msra.mxu0 %v547_v35 }
  0xfa   :  { %v135_v24 = vpop.f32.mrf.mxu0 }
  0xfb   :  { %v136_v25 = vadd.f32 %v438_v23, %v135_v24 }
  0xfc   :  { %v483_v26 = vpop.f32.mrf.mxu0 }
  0xfd   :  { %v141_v27 = vmul.f32 0.01, %v136_v25 }
  0xfe   :  { %v138_v28 = vpop.f32.mrf.mxu0 }
  0xff   :  { %v142_v29 = vmax.f32 %v136_v25, %v141_v27 }
 0x100   :  { %v484_v30 = vpop.f32.mrf.mxu0 }
 0x101   :  { %v160_v31 = vpack.c.bf16 %v142_v29, %v142_v29 }
 0x103   :  { %502 = vmatmul.mubr.bf16.vlgmr.msra.gmra.mxu1 %v160_v31 }
 0x1c3   :  { %v249_v38 = vpop.f32.mrf.mxu1 }
 0x1c4   :  { %v250_v39 = vadd.f32 %v441_v37, %v249_v38 }
 0x1c5   :  { %v503_v40 = vpop.f32.mrf.mxu1 }
 0x1c6   :  { %v255_v41 = vmul.f32 0.01, %v250_v39 }
 0x1c7   :  { %v252_v42 = vpop.f32.mrf.mxu1 }
 0x1c8   :  { %v256_v43 = vmax.f32 %v250_v39, %v255_v41 }
 0x1c9   :  { %v504_v44 = vpop.f32.mrf.mxu1 }
 0x1ca   :  { %v274_v45 = vpack.c.bf16 %v256_v43, %v256_v43 }
 0x1cc   :  { %399 = vmatmul.mubr.bf16.vlgmr.msra.gmra.mxu0 %v274_v45 }
 0x28c   :  { %v400_v53 = vpop.f32.mrf.mxu0 }
 0x28d   :  { %v401_v54 = vadd.f32 %v400_v53, %v279_v51 }
 0x28e   :  { %v402_v55 = vpop.f32.mrf.mxu0 }
 0x28f   :  { %v466_v56 = vmul.f32 -1.442695, %v401_v54  ;;  %v403_v57 = vadd.f32 %v402_v55, %v283_v52 }
 0x290   :  { %v404_v58 = vpop.f32.mrf.mxu0 }
 0x291   :  { %550 = vpow2.f32 %v466_v56  ;;  %v467_v59 = vmul.f32 -1.442695, %v403_v57 }
 0x292   :  { %v405_v60 = vpop.f32.mrf.mxu0 }
 0x293   :  { %552 = vpow2.f32 %v467_v59 }
 0x29e   :  { %v551_v61 = vpop.eup %550 }
 0x29f   :  { %v413_v62 = vadd.f32 1.0, %v551_v61 }
 0x2a0   :  { %v553_v63 = vpop.eup %552 }
 0x2a1   :  { %554 = vrcp.f32 %v413_v62  ;;  %v414_v0 = vadd.f32 1.0, %v553_v63 }
 0x2a3   :  { %556 = vrcp.f32 %v414_v0 }
 0x2ae   :  { %v555_v1 = vpop.eup %554 }
 0x2af   :  { %419 = vst [vmem:[#allocation10] sm:$0xff] %v555_v1 }
 0x2b0   :  { %v557_v2 = vpop.eup %556 }
 0x2b1   :  { %420 = vst [vmem:[#allocation10 + $0x8] sm:$0xff] %v557_v2 }
 0x2b2   :  { %649 = shalt.err (!%p646_p10)
}
 0x2b3   :  { %430 = dma.vmem_to_hbm [thread:$0]  %s428_s6, 256, %s749_s7, [#allocation4]  }
 0x2b4   :  { %664 = dma.done.wait [#allocation4], 256  }
 0x2b5   :  { %665 = vsyncadd [#allocation4], 4294967040 }
 0x2b6   :  { %434 = vsyncpa [#allocation3], 1 }
 0x2b7   :  { %435 = vsyncpa [#allocation6], 1 }
 0x2b8   :  { %436 = vsyncpa [#allocation9], 1 }
 0x2b9   :  { %437 = vsyncpa [#allocation4], 1 }

// kernel: tpu_custom_call.1
= control target key start
LH: loop header
LB: loop body
LE: loop exit
PB: predicated region body
PF: predicated region fallthrough
CT: control target
= control target key end

     0   :  { %12 = vsyncpa [#allocation3], 0  ;;  %s742_s0 = inlined_call_operand.hbm [shape: bf16[8,16], index: 0, kind: input, shape index: {}]   ;;  %s743_s1 = inlined_call_operand.hbm [shape: bf16[16,128], index: 1, kind: input, shape index: {}]   ;;  %s744_s2 = inlined_call_operand.vmem [shape: f32[1,128], index: 2, kind: input, shape index: {}]   ;;  %s745_s3 = inlined_call_operand.hbm [shape: bf16[128,128], index: 3, kind: input, shape index: {}]   ;;  %s746_s4 = inlined_call_operand.vmem [shape: f32[1,128], index: 4, kind: input, shape index: {}]   ;;  %s747_s5 = inlined_call_operand.hbm [shape: bf16[128,256], index: 5, kind: input, shape index: {}]   ;;  %s748_s6 = inlined_call_operand.vmem [shape: f32[1,256], index: 6, kind: input, shape index: {}]   ;;  %s749_s7 = inlined_call_operand.hbm [shape: f32[8,256], index: 7, kind: output, shape index: {}]  }
   0x1   :  { %13 = vsyncpa [#allocation6], 0 }
   0x2   :  { %14 = vsyncpa [#allocation9], 0 }
   0x3   :  { %15 = vsyncpa [#allocation4], 0  ;;  %s666_s24 = smov [#allocation5]  }
   0x4   :  { %s31_s25 = sshll.u32 %s666_s24, 4  ;;  %s32_s25 = int_to_ptr.vmem [resolvable:$true] %s31_s25 }
   0x5   :  { %s566_s26 = scalar_lea.vmem %s32_s25, 128  ;;  %p571_p1 = scmp.lt.s32.totalorder %s32_s25, %s32_s25 }
   0x6   :  { %p567_p0 = scmp.ne.s32.totalorder %s32_s25, %s566_s26  ;;  %p572_p2 = scmp.lt.s32.totalorder %s566_s26, %s566_s26 }
   0x8   :  { %p573_p3 = por %p572_p2, %p571_p1 }
   0xa   :  { %p574_p4 = pnand %p573_p3, %p567_p0 }
   0xc   :  { %577 = shalt.err (!%p574_p4)
}
   0xd   :  { %s667_s27 = smov 64   ;;  %s668_s28 = smov 4  }
   0xe   :  { %37 = dma.hbm_to_vmem [thread:$0]  %s743_s1, 128, %s32_s25, [#allocation6], %s667_s27, %s667_s27, %s668_s28  }
   0xf   :  { %s669_s8 = smov [#allocation2]   ;;  %s670_s10 = smov [#allocation7]  }
  0x10   :  { %s22_s9 = sshll.u32 %s669_s8, 4  ;;  %s45_s11 = sshll.u32 %s670_s10, 4  ;;  %s23_s9 = int_to_ptr.vmem [resolvable:$true] %s22_s9  ;;  %s46_s11 = int_to_ptr.vmem [resolvable:$true] %s45_s11 }
  0x11   :  { %s586_s12 = scalar_lea.vmem %s23_s9, 64  ;;  %p591_p6 = scmp.lt.s32.totalorder %s23_s9, %s23_s9 }
  0x12   :  { %p587_p5 = scmp.ne.s32.totalorder %s23_s9, %s586_s12  ;;  %p592_p7 = scmp.lt.s32.totalorder %s586_s12, %s586_s12 }
  0x14   :  { %p593_p8 = por %p592_p7, %p591_p6 }
  0x16   :  { %p594_p9 = pnand %p593_p8, %p587_p5 }
  0x18   :  { %597 = shalt.err (!%p594_p9)
}
  0x19   :  { %25 = dma.hbm_to_vmem [thread:$0]  %s742_s0, 64, %s23_s9, [#allocation3]  }
  0x1a   :  { %s606_s15 = scalar_lea.vmem %s46_s11, 1024  ;;  %p611_p11 = scmp.lt.s32.totalorder %s46_s11, %s46_s11 }
  0x1b   :  { %p607_p10 = scmp.ne.s32.totalorder %s46_s11, %s606_s15  ;;  %p612_p12 = scmp.lt.s32.totalorder %s606_s15, %s606_s15 }
  0x1d   :  { %p613_p13 = por %p612_p12, %p611_p11 }
  0x1f   :  { %p614_p0 = pnand %p613_p13, %p607_p10 }
  0x21   :  { %617 = shalt.err (!%p614_p0)
}
  0x22   :  { %51 = dma.hbm_to_vmem [thread:$0]  %s745_s3, 1024, %s46_s11, [#allocation6], %s667_s27, %s667_s27, %s668_s28  }
  0x23   :  { %s671_s17 = smov [#allocation8]  }
  0x24   :  { %s59_s18 = sshll.u32 %s671_s17, 4  ;;  %s60_s18 = int_to_ptr.vmem [resolvable:$true] %s59_s18 }
  0x25   :  { %s626_s19 = scalar_lea.vmem %s60_s18, 2048  ;;  %p631_p2 = scmp.lt.s32.totalorder %s60_s18, %s60_s18 }
  0x26   :  { %p627_p1 = scmp.ne.s32.totalorder %s60_s18, %s626_s19  ;;  %p632_p3 = scmp.lt.s32.totalorder %s626_s19, %s626_s19 }
  0x28   :  { %p633_p4 = por %p632_p3, %p631_p2 }
  0x2a   :  { %p634_p5 = pnand %p633_p4, %p627_p1 }
  0x2c   :  { %637 = shalt.err (!%p634_p5)
}
  0x2d   :  { %s672_s0 = smov 128   ;;  %s673_s20 = smov 8  }
  0x2e   :  { %65 = dma.hbm_to_vmem [thread:$0]  %s747_s5, 2048, %s60_s18, [#allocation9], %s672_s0, %s672_s0, %s673_s20  }
  0x2f   :  { %658 = dma.done.wait [#allocation3], 64  }
  0x30   :  { %659 = vsyncadd [#allocation3], 4294967232 }
  0x31   :  { %660 = dma.done.wait [#allocation6], 1152  }
  0x32   :  { %661 = vsyncadd [#allocation6], 4294966144 }
  0x33   :  { %662 = dma.done.wait [#allocation9], 2048  }
  0x34   :  { %663 = vsyncadd [#allocation9], 4294965248  ;;  %v674_v0 = vmov 0.0   ;;  %vm675_vm0 = vmmov 0   ;;  %v517_v1 = vld [vmem:[#allocation5] sm:$0xff]   ;;  %vm97_vm1 = vcmask 130048   ;;  %v276_v46 = vlaneseq }
  0x35   :  { %479 = vmatprep.subr.bf16.mxu0 %v674_v0  ;;  %481 = vmatprep.mubr.msk.bf16.mxu0 %vm675_vm0, %v674_v0  ;;  %v81_v2 = vld [vmem:[#allocation2] sm:$0xf]  ;;  %v518_v3 = vld [vmem:[#allocation7 + $0x38] sm:$0xff]   ;;  %v520_v5 = vld [vmem:[#allocation7 + $0x28] sm:$0xff]   ;;  %v676_v36 = vmov 0  }
  0x36   :  { %485 = vmatprep.subr.bf16.mxu1 %v674_v0  ;;  %501 = vmatprep.mubr.msk.bf16.mxu1 %vm675_vm0, %v674_v0  ;;  %v519_v4 = vld [vmem:[#allocation7 + $0x30] sm:$0xff]   ;;  %v521_v6 = vld [vmem:[#allocation7 + $0x20] sm:$0xff]   ;;  %v522_v7 = vld [vmem:[#allocation7 + $0x18] sm:$0xff]   ;;  %v277_v47 = vshrl.u32 %v276_v46, 7 }
  0x37   :  { %480 = vmatpush3.bf16.msra.mxu0 %v517_v1  ;;  %486 = vmatpush3.bf16.msra.mxu1 %v518_v3  ;;  %v523_v8 = vld [vmem:[#allocation7 + $0x10] sm:$0xff]   ;;  %v524_v9 = vld [vmem:[#allocation7 + $0x8] sm:$0xff]   ;;  %v525_v10 = vld [vmem:[#allocation7] sm:$0xff]  }
  0x38   :  { %487 = vmatprep.subr.bf16.mxu1 %v674_v0  ;;  %v526_v11 = vld [vmem:[#allocation8 + $0x70] ss:$8 sps:$4 sm:$0xff]   ;;  %v528_v12 = vld [vmem:[#allocation8 + $0x74] ss:$8 sps:$4 sm:$0xff]   ;;  %v531_v13 = vld [vmem:[#allocation8 + $0x64] ss:$8 sps:$4 sm:$0xff]  }
  0x39   :  { %366 = vmatprep.subr.bf16.mxu0 %v528_v12  ;;  %v529_v14 = vld [vmem:[#allocation8 + $0x60] ss:$8 sps:$4 sm:$0xff]   ;;  %v534_v15 = vld [vmem:[#allocation8 + $0x54] ss:$8 sps:$4 sm:$0xff]   ;;  %v532_v16 = vld [vmem:[#allocation8 + $0x50] ss:$8 sps:$4 sm:$0xff]  }
  0x3a   :  { %482 = vmatmul.mubr.msk.bf16.vlgmr.msra.gmra.mxu0 %vm97_vm1, %v81_v2  ;;  %v537_v17 = vld [vmem:[#allocation8 + $0x44] ss:$8 sps:$4 sm:$0xff]   ;;  %v535_v18 = vld [vmem:[#allocation8 + $0x40] ss:$8 sps:$4 sm:$0xff]   ;;  %v540_v19 = vld [vmem:[#allocation8 + $0x34] ss:$8 sps:$4 sm:$0xff]  }
  0x3b   :  { %488 = vmatpush3.bf16.msra.mxu1 %v519_v4  ;;  %367 = vmatpush1.bf16.msra.mxu0 %v526_v11  ;;  %v538_v20 = vld [vmem:[#allocation8 + $0x30] ss:$8 sps:$4 sm:$0xff]   ;;  %v543_v21 = vld [vmem:[#allocation8 + $0x24] ss:$8 sps:$4 sm:$0xff]   ;;  %v541_v22 = vld [vmem:[#allocation8 + $0x20] ss:$8 sps:$4 sm:$0xff]  }
  0x3c   :  { %489 = vmatprep.subr.bf16.mxu1 %v674_v0  ;;  %368 = vmatprep.subr.bf16.mxu0 %v531_v13  ;;  %v438_v23 = vld [vmem:[%s744_s2] ss:$0 sm:$0xff]  ;;  %v544_v33 = vld [vmem:[#allocation8 + $0x10] ss:$8 sps:$4 sm:$0xff]   ;;  %v549_v34 = vld [vmem:[#allocation8 + $0x4] ss:$8 sps:$4 sm:$0xff]  }
  0x3d   :  { %v546_v32 = vld [vmem:[#allocation8 + $0x14] ss:$8 sps:$4 sm:$0xff]   ;;  %v547_v35 = vld [vmem:[#allocation8] ss:$8 sps:$4 sm:$0xff]   ;;  %398 = vmatprep.mubr.bf16.mxu0 %v676_v36  ;;  %v278_v48 = vsub.s32 0, %v277_v47  ;;  %v282_v50 = vsub.s32 1, %v277_v47 }
  0x3e   :  { %v441_v37 = vld [vmem:[%s746_s4] ss:$0 sm:$0xff]  ;;  %s677_s4 = smov [#allocation10]  }
  0x3f   :  { %490 = vmatpush3.bf16.msra.mxu1 %v520_v5  ;;  %369 = vmatpush1.bf16.msra.mxu0 %v529_v14  ;;  %v273_v49 = vld [vmem:[%s748_s6] sm:$0x3]  ;;  %s427_s6 = sshll.u32 %s677_s4, 4  ;;  %s428_s6 = int_to_ptr.vmem [resolvable:$true] %s427_s6 }
  0x40   :  { %491 = vmatprep.subr.bf16.mxu1 %v674_v0  ;;  %370 = vmatprep.subr.bf16.mxu0 %v534_v15  ;;  %v279_v51 = vrot.slane %v273_v49, %v278_v48  ;;  %v283_v52 = vrot.slane %v273_v49, %v282_v50  ;;  %s638_s26 = scalar_lea.vmem %s428_s6, 256  ;;  %p643_p7 = scmp.lt.s32.totalorder %s428_s6, %s428_s6 }
  0x41   :  { %p639_p6 = scmp.ne.s32.totalorder %s428_s6, %s638_s26  ;;  %p644_p8 = scmp.lt.s32.totalorder %s638_s26, %s638_s26 }
  0x43   :  { %492 = vmatpush3.bf16.msra.mxu1 %v521_v6  ;;  %371 = vmatpush1.bf16.msra.mxu0 %v532_v16  ;;  %p645_p9 = por %p644_p8, %p643_p7 }
  0x44   :  { %493 = vmatprep.subr.bf16.mxu1 %v674_v0  ;;  %372 = vmatprep.subr.bf16.mxu0 %v537_v17 }
  0x45   :  { %p646_p10 = pnand %p645_p9, %p639_p6 }
  0x47   :  { %494 = vmatpush3.bf16.msra.mxu1 %v522_v7  ;;  %373 = vmatpush1.bf16.msra.mxu0 %v535_v18 }
  0x48   :  { %495 = vmatprep.subr.bf16.mxu1 %v674_v0  ;;  %374 = vmatprep.subr.bf16.mxu0 %v540_v19 }
  0x4b   :  { %496 = vmatpush3.bf16.msra.mxu1 %v523_v8  ;;  %375 = vmatpush1.bf16.msra.mxu0 %v538_v20 }
  0x4c   :  { %497 = vmatprep.subr.bf16.mxu1 %v674_v0  ;;  %376 = vmatprep.subr.bf16.mxu0 %v543_v21 }
  0x4f   :  { %498 = vmatpush3.bf16.msra.mxu1 %v524_v9  ;;  %377 = vmatpush1.bf16.msra.mxu0 %v541_v22 }
  0x50   :  { %499 = vmatprep.subr.bf16.mxu1 %v674_v0  ;;  %378 = vmatprep.subr.bf16.mxu0 %v546_v32 }
  0x53   :  { %500 = vmatpush3.bf16.msra.mxu1 %v525_v10  ;;  %379 = vmatpush1.bf16.msra.mxu0 %v544_v33 }
  0x54   :  { %380 = vmatprep.subr.bf16.mxu0 %v549_v34 }
  0x57   :  { %381 = vmatpush1.bf16.msra.mxu0 %v547_v35 }
  0xfa   :  { %v135_v24 = vpop.f32.mrf.mxu0 }
  0xfb   :  { %v136_v25 = vadd.f32 %v438_v23, %v135_v24 }
  0xfc   :  { %v483_v26 = vpop.f32.mrf.mxu0 }
  0xfd   :  { %v141_v27 = vmul.f32 0.01, %v136_v25 }
  0xfe   :  { %v138_v28 = vpop.f32.mrf.mxu0 }
  0xff   :  { %v142_v29 = vmax.f32 %v136_v25, %v141_v27 }
 0x100   :  { %v484_v30 = vpop.f32.mrf.mxu0 }
 0x101   :  { %v160_v31 = vpack.c.bf16 %v142_v29, %v142_v29 }
 0x103   :  { %502 = vmatmul.mubr.bf16.vlgmr.msra.gmra.mxu1 %v160_v31 }
 0x1c3   :  { %v249_v38 = vpop.f32.mrf.mxu1 }
 0x1c4   :  { %v250_v39 = vadd.f32 %v441_v37, %v249_v38 }
 0x1c5   :  { %v503_v40 = vpop.f32.mrf.mxu1 }
 0x1c6   :  { %v255_v41 = vmul.f32 0.01, %v250_v39 }
 0x1c7   :  { %v252_v42 = vpop.f32.mrf.mxu1 }
 0x1c8   :  { %v256_v43 = vmax.f32 %v250_v39, %v255_v41 }
 0x1c9   :  { %v504_v44 = vpop.f32.mrf.mxu1 }
 0x1ca   :  { %v274_v45 = vpack.c.bf16 %v256_v43, %v256_v43 }
 0x1cc   :  { %399 = vmatmul.mubr.bf16.vlgmr.msra.gmra.mxu0 %v274_v45 }
 0x28c   :  { %v400_v53 = vpop.f32.mrf.mxu0 }
 0x28d   :  { %v401_v54 = vadd.f32 %v400_v53, %v279_v51 }
 0x28e   :  { %v402_v55 = vpop.f32.mrf.mxu0 }
 0x28f   :  { %v466_v56 = vmul.f32 -1.442695, %v401_v54  ;;  %v403_v57 = vadd.f32 %v402_v55, %v283_v52 }
 0x290   :  { %v404_v58 = vpop.f32.mrf.mxu0 }
 0x291   :  { %550 = vpow2.f32 %v466_v56  ;;  %v467_v59 = vmul.f32 -1.442695, %v403_v57 }
 0x292   :  { %v405_v60 = vpop.f32.mrf.mxu0 }
 0x293   :  { %552 = vpow2.f32 %v467_v59 }
 0x29e   :  { %v551_v61 = vpop.eup %550 }
 0x29f   :  { %v413_v62 = vadd.f32 1.0, %v551_v61 }
 0x2a0   :  { %v553_v63 = vpop.eup %552 }
 0x2a1   :  { %554 = vrcp.f32 %v413_v62  ;;  %v414_v0 = vadd.f32 1.0, %v553_v63 }
 0x2a3   :  { %556 = vrcp.f32 %v414_v0 }
 0x2ae   :  { %v555_v1 = vpop.eup %554 }
 0x2af   :  { %419 = vst [vmem:[#allocation10] sm:$0xff] %v555_v1 }
 0x2b0   :  { %v557_v2 = vpop.eup %556 }
 0x2b1   :  { %420 = vst [vmem:[#allocation10 + $0x8] sm:$0xff] %v557_v2 }
 0x2b2   :  { %649 = shalt.err (!%p646_p10)
}
 0x2b3   :  { %430 = dma.vmem_to_hbm [thread:$0]  %s428_s6, 256, %s749_s7, [#allocation4]  }
 0x2b4   :  { %664 = dma.done.wait [#allocation4], 256  }
 0x2b5   :  { %665 = vsyncadd [#allocation4], 4294967040 }
 0x2b6   :  { %434 = vsyncpa [#allocation3], 1 }
 0x2b7   :  { %435 = vsyncpa [#allocation6], 1 }
 0x2b8   :  { %436 = vsyncpa [#allocation9], 1 }
 0x2b9   :  { %437 = vsyncpa [#allocation4], 1 }

</bundles_post_ra>
